<compile_context>
chip_gen: v7x
topology: tpu7x:2x2x1
jax: 0.10.0
libtpu: 0.0.40
codegen_flags: <defaults>
</compile_context>

<pallas_src>
import functools

import jax
import jax.numpy as jnp
from jax.experimental import pallas as pl
from jax.experimental.pallas import tpu as pltpu


_LANES = 512                           # lane-dense last dim (multiple of 128)
_SMALL_BYTES = 8 * 1024 * 1024         # <= this: single full-extent block, no grid
_SMALL_VMEM_LIMIT = 40 * 1024 * 1024   # in + out whole-array buffers, safe everywhere
_PACK_ELEMS = 32 * 128                 # 1-D block granularity (covers int8 packing)


def _affine_kernel(x_ref, o_ref):
    # Elementwise y = x * 2 + 1 on the whole VMEM tile (VPU). Python int
    # literals are weakly typed, so the input dtype is preserved.
    o_ref[...] = x_ref[...] * 2 + 1


@functools.lru_cache(maxsize=1)
def _chip_config():
    """Per-generation tiling knobs: (block_bytes, vmem_limit, dim_candidates)."""
    vmem_cap = 64 * 1024 * 1024
    try:
        info = pltpu.get_tpu_info()
        vmem_cap = int(getattr(info, "vmem_capacity_bytes", vmem_cap))
    except Exception:
        pass
    kind = ""
    try:
        kind = jax.devices()[0].device_kind.lower()
    except Exception:
        pass
    multi_core = ("7x" in kind) or ("v7" in kind) or ("tpu7" in kind)

    if (not multi_core) and vmem_cap >= 128 * 1024 * 1024:
        # v5e / v6e: 128 MiB physical VMEM -> big blocks amortize per-step cost.
        block_bytes, vmem_limit = 12 * 1024 * 1024, 64 * 1024 * 1024
    else:
        # v7x (64 MiB VMEM per TC) or unknown: keep pipelined VMEM well under cap.
        block_bytes, vmem_limit = 8 * 1024 * 1024, 48 * 1024 * 1024

    if multi_core:
        # CORE_PARALLEL engages both v7x TensorCores; keep a "parallel" fallback.
        dim_candidates = ((pltpu.CORE_PARALLEL,), ("parallel",))
    else:
        dim_candidates = (("parallel",),)
    return block_bytes, vmem_limit, dim_candidates


def _run_whole(x_arr):
    """Single-invocation path: whole array as one VMEM block (no grid)."""
    return pl.pallas_call(
        _affine_kernel,
        out_shape=jax.ShapeDtypeStruct(x_arr.shape, x_arr.dtype),
        compiler_params=pltpu.CompilerParams(vmem_limit_bytes=_SMALL_VMEM_LIMIT),
    )(x_arr)


def _run_tiled(x_arr, block_shape, index_map, grid, vmem_limit, dim_candidates):
    """1-D grid of big blocks; partial last block handled by Pallas masking."""
    last_err = None
    for sems in dim_candidates:
        try:
            return pl.pallas_call(
                _affine_kernel,
                out_shape=jax.ShapeDtypeStruct(x_arr.shape, x_arr.dtype),
                grid=grid,
                in_specs=[pl.BlockSpec(block_shape, index_map)],
                out_specs=pl.BlockSpec(block_shape, index_map),
                compiler_params=pltpu.CompilerParams(
                    dimension_semantics=sems,
                    vmem_limit_bytes=vmem_limit,
                ),
            )(x_arr)
        except Exception as e:  # fall back to safer dimension semantics
            last_err = e
    raise last_err


def _forward_aligned(flat, itemsize, block_bytes, vmem_limit, dim_candidates):
    """flat.size is a multiple of 512: lane-dense (rows, 512) slab."""
    total = flat.shape[0]
    rows = total // _LANES
    x2d = flat.reshape(rows, _LANES)
    if total * itemsize <= _SMALL_BYTES:
        return _run_whole(x2d)
    row_bytes = _LANES * itemsize
    block_rows = max(32, (block_bytes // row_bytes) // 32 * 32)  # 32: sublane pack
    block_rows = min(block_rows, pl.cdiv(rows, 32) * 32)         # don't exceed array
    grid = (pl.cdiv(rows, block_rows),)
    return _run_tiled(x2d, (block_rows, _LANES), lambda i: (i, 0), grid,
                      vmem_limit, dim_candidates)


def _forward_ragged(flat, itemsize, block_bytes, vmem_limit, dim_candidates):
    """flat.size not a multiple of 512: process 1-D, no pad / slice copies."""
    total = flat.shape[0]
    if total * itemsize <= _SMALL_BYTES:
        return _run_whole(flat)
    chunk = max(_PACK_ELEMS, (block_bytes // itemsize) // _PACK_ELEMS * _PACK_ELEMS)
    chunk = min(chunk, pl.cdiv(total, _PACK_ELEMS) * _PACK_ELEMS)
    grid = (pl.cdiv(total, chunk),)
    return _run_tiled(flat, (chunk,), lambda i: (i,), grid,
                      vmem_limit, dim_candidates)


def _forward_ragged_padded(flat, itemsize, block_bytes, vmem_limit, dim_candidates):
    """Safety fallback for ragged sizes: pad to a 512 multiple, slice back."""
    total = flat.shape[0]
    padded = pl.cdiv(total, _LANES) * _LANES
    flat_p = jnp.pad(flat, (0, padded - total))
    y2d = _forward_aligned(flat_p, itemsize, block_bytes, vmem_limit, dim_candidates)
    return y2d.reshape(-1)[:total]


def pt_module_forward(x: jax.Array) -> jax.Array:
    """Equivalent of PtModule.forward: returns x * 2 + 1 (same shape/dtype)."""
    orig_shape = x.shape
    itemsize = jnp.dtype(x.dtype).itemsize
    total = int(x.size)
    if total == 0:
        return x

    block_bytes, vmem_limit, dim_candidates = _chip_config()
    flat = x.reshape(-1)

    if total % _LANES == 0:
        y2d = _forward_aligned(flat, itemsize, block_bytes, vmem_limit,
                               dim_candidates)
        return y2d.reshape(orig_shape)

    try:
        y_flat = _forward_ragged(flat, itemsize, block_bytes, vmem_limit,
                                 dim_candidates)
    except Exception:  # guaranteed-working padded fallback
        y_flat = _forward_ragged_padded(flat, itemsize, block_bytes, vmem_limit,
                                        dim_candidates)
    return y_flat.reshape(orig_shape)


if __name__ == "__main__":
    key = jax.random.PRNGKey(0)
    k0, k1, k2, k3 = jax.random.split(key, 4)

    # Primary case: small NCHW tensor consistent with the module.
    x = jax.random.normal(k0, (2, 4, 16, 16), dtype=jnp.float32)
    y = jax.block_until_ready(pt_module_forward(x))
    assert y.shape == x.shape and y.dtype == x.dtype
    assert jnp.allclose(y, x * 2 + 1, atol=1e-6, rtol=1e-6)

    # Non-512-divisible element count: ragged, pad-free 1-D path.
    x_odd = jax.random.normal(k1, (3, 5, 7, 11), dtype=jnp.float32)
    y_odd = jax.block_until_ready(pt_module_forward(x_odd))
    assert jnp.allclose(y_odd, x_odd * 2 + 1, atol=1e-6, rtol=1e-6)

    # Larger aligned tensor (> 8 MiB): tiled 2-D path with a partial last block.
    x_big = jax.random.normal(k2, (4, 3, 512, 520), dtype=jnp.float32)
    y_big = jax.block_until_ready(pt_module_forward(x_big))
    assert jnp.allclose(y_big, x_big * 2 + 1, atol=1e-6, rtol=1e-6)

    # Larger ragged tensor (> 8 MiB): tiled 1-D path, no pad/slice round trips.
    x_rag = jax.random.normal(k3, (3, 1_048_577), dtype=jnp.float32)
    y_rag = jax.block_until_ready(pt_module_forward(x_rag))
    assert jnp.allclose(y_rag, x_rag * 2 + 1, atol=1e-6, rtol=1e-6)

    print("KERNEL_OK")
</pallas_src>

<mosaic_0001>
module attributes {stable_mosaic.version = 11 : i64} {
  func.func @_affine_kernel(%arg0: memref<4x512xf32, #tpu.memory_space<vmem>>, %arg1: memref<4x512xf32, #tpu.memory_space<vmem>>) attributes {dimension_semantics = [], scalar_prefetch = 0 : i64, scratch_operands = 0 : i64, tpu.core_type = #tpu.core_type<tc>} {
    %c0 = arith.constant 0 : index
    %c0_0 = arith.constant 0 : index
    %0 = vector.load %arg0[%c0, %c0_0] : memref<4x512xf32, #tpu.memory_space<vmem>>, vector<4x512xf32>
    %cst = arith.constant 2.000000e+00 : f32
    %1 = vector.broadcast %cst : f32 to vector<4x512xf32>
    %2 = arith.mulf %0, %1 : vector<4x512xf32>
    %cst_1 = arith.constant 1.000000e+00 : f32
    %3 = vector.broadcast %cst_1 : f32 to vector<4x512xf32>
    %4 = arith.addf %2, %3 : vector<4x512xf32>
    %c0_2 = arith.constant 0 : index
    %c0_3 = arith.constant 0 : index
    %5 = vector.load %arg1[%c0_2, %c0_3] : memref<4x512xf32, #tpu.memory_space<vmem>>, vector<4x512xf32>
    tpu.vector_store %arg1[%c0_2, %c0_3], %4 {strides = array<i32>} : memref<4x512xf32, #tpu.memory_space<vmem>>, vector<4x512xf32>,
    return
  }
}

</mosaic_0001>

<bundles_post_ra>
// kernel: tpu_custom_call.1
= control target key start
LH: loop header
LB: loop body
LE: loop exit
PB: predicated region body
PF: predicated region fallthrough
CT: control target
= control target key end

     0   :  { %6 = vsyncpa [#allocation3], 0  ;;  %s130_s0 = inlined_call_operand.hbm [shape: f32[4,512], index: 0, kind: input, shape index: {}]   ;;  %s131_s1 = inlined_call_operand.hbm [shape: f32[4,512], index: 1, kind: output, shape index: {}]  }
   0x1   :  { %7 = vsyncpa [#allocation4], 0  ;;  %s94_s6 = smov [#allocation2]   ;;  %s46_s10 = scalar_lea.hbm %s130_s0, 256 }
   0x2   :  { %s14_s7 = sshll.u32 %s94_s6, 4  ;;  %p47_p0 = scmp.ne.s32.totalorder %s130_s0, %s46_s10  ;;  %s15_s7 = int_to_ptr.vmem [resolvable:$true] %s14_s7 }
   0x3   :  { %p50_p1 = scmp.lt.u32.totalorder %s46_s10, %s130_s0 }
   0x5   :  { %p52_p2 = pnand %p50_p1, %p47_p0 }
   0x7   :  { %55 = shalt.err (!%p52_p2)
}
   0x8   :  { %s56_s15 = scalar_lea.vmem %s15_s7, 256  ;;  %p61_p4 = scmp.lt.s32.totalorder %s15_s7, %s15_s7 }
   0x9   :  { %p57_p3 = scmp.ne.s32.totalorder %s15_s7, %s56_s15  ;;  %p62_p5 = scmp.lt.s32.totalorder %s56_s15, %s56_s15 }
   0xb   :  { %p63_p6 = por %p62_p5, %p61_p4 }
   0xd   :  { %p64_p7 = pnand %p63_p6, %p57_p3 }
   0xf   :  { %67 = shalt.err (!%p64_p7)
}
  0x10   :  { %17 = dma.hbm_to_vmem [thread:$0]  %s130_s0, 256, %s15_s7, [#allocation3]  }
  0x11   :  { %90 = dma.done.wait [#allocation3], 256  }
  0x12   :  { %91 = vsyncadd [#allocation3], 4294967040  ;;  %v21_v0 = vld [vmem:[#allocation2] sm:$0xff]  ;;  %v22_v1 = vld [vmem:[#allocation2 + $0x8] sm:$0xff]  ;;  %s95_s18 = smov [#allocation5]  }
  0x13   :  { %s35_s19 = sshll.u32 %s95_s18, 4  ;;  %v23_v2 = vmul.f32 2.0, %v21_v0  ;;  %v24_v3 = vmul.f32 2.0, %v22_v1  ;;  %s36_s19 = int_to_ptr.vmem [resolvable:$true] %s35_s19 }
  0x14   :  { %s68_s20 = scalar_lea.vmem %s36_s19, 256  ;;  %p73_p9 = scmp.lt.s32.totalorder %s36_s19, %s36_s19 }
  0x15   :  { %v25_v4 = vadd.f32 1.0, %v23_v2  ;;  %v26_v5 = vadd.f32 1.0, %v24_v3  ;;  %p69_p8 = scmp.ne.s32.totalorder %s36_s19, %s68_s20  ;;  %p74_p10 = scmp.lt.s32.totalorder %s68_s20, %s68_s20 }
  0x17   :  { %27 = vst [vmem:[#allocation5] sm:$0xff] %v25_v4  ;;  %28 = vst [vmem:[#allocation5 + $0x8] sm:$0xff] %v26_v5  ;;  %p75_p11 = por %p74_p10, %p73_p9 }
  0x19   :  { %p76_p12 = pnand %p75_p11, %p69_p8 }
  0x1b   :  { %79 = shalt.err (!%p76_p12)
}
  0x1c   :  { %s80_s22 = scalar_lea.hbm %s131_s1, 256 }
  0x1d   :  { %p81_p13 = scmp.ne.s32.totalorder %s131_s1, %s80_s22  ;;  %p84_p0 = scmp.lt.u32.totalorder %s80_s22, %s131_s1 }
  0x1f   :  { %p86_p1 = pnand %p84_p0, %p81_p13 }
  0x21   :  { %89 = shalt.err (!%p86_p1)
}
  0x22   :  { %38 = dma.vmem_to_hbm [thread:$0]  %s36_s19, 256, %s131_s1, [#allocation4]  }
  0x23   :  { %92 = dma.done.wait [#allocation4], 256  }
  0x24   :  { %93 = vsyncadd [#allocation4], 4294967040 }
  0x25   :  { %42 = vsyncpa [#allocation3], 1 }
  0x26   :  { %43 = vsyncpa [#allocation4], 1 }

</bundles_post_ra>
